<compile_context>
chip_gen: v5e
topology: v5e:2x2
jax: 0.10.0
libtpu: 0.0.40
codegen_flags: <defaults>
</compile_context>

<pallas_src>
import functools

import jax
import jax.numpy as jnp
from jax.experimental import pallas as pl
from jax.experimental.pallas import tpu as pltpu


def _pow_one_minus(p_t, gamma):
    """(1 - p_t) ** gamma, avoiding exp+log for small integer gamma."""
    u = 1.0 - p_t
    if gamma == 0.0:
        return jnp.ones_like(u)
    if gamma == float(int(gamma)) and 1.0 <= gamma <= 4.0:
        r = u
        for _ in range(int(gamma) - 1):
            r = r * u
        return r
    return jnp.power(u, gamma)  # non-integer gamma fallback (2 EUP transcendentals)


def _focal_bce_kernel(x_ref, t_ref, out_ref, acc_ref, *,
                      alpha, gamma, bce_weight, focal_weight,
                      label_smoothing, inv_n, total_rows, block_rows,
                      chunks_per_part, needs_mask):
    p_id = pl.program_id(0)   # partition axis ("parallel" -> megacore on v7x)
    j = pl.program_id(1)      # chunk-within-partition axis ("arbitrary")

    @pl.when(j == 0)
    def _():
        acc_ref[...] = jnp.zeros_like(acc_ref)

    x = x_ref[...].astype(jnp.float32)
    t = t_ref[...].astype(jnp.float32)

    if label_smoothing:  # static python branch (matches `if self.label_smoothing:`)
        t = t * (1.0 - label_smoothing) + 0.5 * label_smoothing

    # e = exp(-|x|) is shared between the stable BCE term and the sigmoid.
    e = jnp.exp(-jnp.abs(x))
    # Numerically-stable BCE with logits: max(x,0) - x*t + log1p(exp(-|x|))
    ce = jnp.maximum(x, 0.0) - x * t + jnp.log1p(e)

    # sigmoid(x) = where(x>=0, 1, e) / (1 + e)  -- no second transcendental.
    inv_1pe = pl.reciprocal(1.0 + e, approx=True)
    p = jnp.where(x >= 0.0, 1.0, e) * inv_1pe

    # torchvision.ops.sigmoid_focal_loss semantics
    p_t = p * t + (1.0 - p) * (1.0 - t)
    focal = ce * _pow_one_minus(p_t, gamma)
    if alpha >= 0:  # static python branch
        alpha_t = alpha * t + (1.0 - alpha) * (1.0 - t)
        focal = alpha_t * focal

    # Fused weighted contribution (both means share the same 1/N denominator).
    contrib = bce_weight * ce + focal_weight * focal

    if needs_mask:  # emitted only when padded rows/chunks exist
        chunk = p_id * chunks_per_part + j     # UNclamped global chunk index
        rows = jax.lax.broadcasted_iota(jnp.int32, contrib.shape, 0)
        valid = (chunk * block_rows + rows) < total_rows
        contrib = jnp.where(valid, contrib, 0.0)

    # Pure VPU elementwise accumulation; no per-step cross-lane reduce.
    acc_ref[...] = acc_ref[...] + contrib

    @pl.when(j == pl.num_programs(1) - 1)
    def _():
        row_sum = jnp.sum(acc_ref[...], axis=1, keepdims=True)   # (rows, 1)
        total = jnp.sum(row_sum, axis=0, keepdims=True)          # (1, 1)
        out_ref[...] = total * inv_n


def _pick_block_rows(B, C, itemsize, target_block_bytes=2 << 20):
    """Largest sublane-aligned row tile with ~2 MiB per input block."""
    sub = 8 if itemsize >= 4 else (16 if itemsize == 2 else 32)
    if B * C * itemsize <= target_block_bytes or B <= sub:
        return B  # full-batch block (always a legal block shape)
    rows = (target_block_bytes // (C * itemsize)) // sub * sub
    rows = max(sub, rows)
    return min(rows, (B // sub) * sub)


def focal_bce_loss(inputs, targets, *, alpha=0.25, gamma=2.0,
                   bce_weight=1.0, focal_weight=1.0,
                   label_smoothing=0.0, block_rows=None, num_partitions=None):
    """Pallas implementation of FocalBCELoss.forward (reduction='mean')."""
    assert inputs.shape == targets.shape and inputs.ndim == 2
    B, C = inputs.shape
    itemsize = jnp.dtype(inputs.dtype).itemsize
    if block_rows is None:
        block_rows = _pick_block_rows(B, C, itemsize)
    block_rows = min(int(block_rows), B)

    total_chunks = pl.cdiv(B, block_rows)
    if num_partitions is None:
        num_partitions = 2 if total_chunks >= 2 else 1  # 2 TCs on v7x; ~free elsewhere
    num_partitions = max(1, min(int(num_partitions), total_chunks))
    chunks_per_part = pl.cdiv(total_chunks, num_partitions)
    padded_chunks = num_partitions * chunks_per_part

    needs_clamp = padded_chunks != total_chunks
    needs_mask = (padded_chunks * block_rows) != B
    n_elem = B * C

    if needs_clamp:
        # Clamp padded chunks onto the last valid block; the in-kernel row mask
        # (computed from the UNclamped index) zeroes their contribution.
        def in_map(p, j):
            return (jnp.minimum(p * chunks_per_part + j, total_chunks - 1), 0)
    else:
        def in_map(p, j):
            return (p * chunks_per_part + j, 0)

    kernel = functools.partial(
        _focal_bce_kernel,
        alpha=float(alpha), gamma=float(gamma),
        bce_weight=float(bce_weight), focal_weight=float(focal_weight),
        label_smoothing=float(label_smoothing), inv_n=1.0 / float(n_elem),
        total_rows=B, block_rows=block_rows,
        chunks_per_part=chunks_per_part, needs_mask=needs_mask)

    partial_sums = pl.pallas_call(
        kernel,
        out_shape=jax.ShapeDtypeStruct((num_partitions, 1), jnp.float32),
        grid_spec=pltpu.PrefetchScalarGridSpec(
            num_scalar_prefetch=0,
            grid=(num_partitions, chunks_per_part),
            in_specs=[
                pl.BlockSpec((block_rows, C), in_map),
                pl.BlockSpec((block_rows, C), in_map),
            ],
            out_specs=pl.BlockSpec((1, 1), lambda p, j: (p, 0)),
            scratch_shapes=[
                pltpu.VMEM((block_rows, C), jnp.float32),  # fused weighted-sum acc
            ],
        ),
        compiler_params=pltpu.CompilerParams(
            dimension_semantics=("parallel", "arbitrary"),
            vmem_limit_bytes=32 * 1024 * 1024),
    )(inputs, targets)
    # Tiny cross-partition reduce (<= 2 scalars) in the wrapper.
    return jnp.sum(partial_sums)


def _focal_bce_loss_ref(inputs, targets, *, alpha=0.25, gamma=2.0,
                        bce_weight=1.0, focal_weight=1.0, label_smoothing=0.0):
    """Pure-JAX reference mirroring the PyTorch module (reduction='mean')."""
    t = targets
    if label_smoothing:
        t = t * (1.0 - label_smoothing) + 0.5 * label_smoothing
    x = inputs
    ce = jnp.maximum(x, 0.0) - x * t + jnp.log1p(jnp.exp(-jnp.abs(x)))
    p = jax.nn.sigmoid(x)
    p_t = p * t + (1.0 - p) * (1.0 - t)
    focal = ce * jnp.power(1.0 - p_t, gamma)
    if alpha >= 0:
        alpha_t = alpha * t + (1.0 - alpha) * (1.0 - t)
        focal = alpha_t * focal
    return bce_weight * jnp.mean(ce) + focal_weight * jnp.mean(focal)


if __name__ == "__main__":
    # Small multi-label classification shapes: batch=8, num_classes=256.
    key = jax.random.PRNGKey(0)
    k1, k2, k3, k4 = jax.random.split(key, 4)
    B, C = 8, 256
    logits = jax.random.normal(k1, (B, C), dtype=jnp.float32) * 2.0
    targets = jax.random.bernoulli(k2, p=0.1, shape=(B, C)).astype(jnp.float32)

    loss = focal_bce_loss(logits, targets,
                          alpha=0.25, gamma=2.0,
                          bce_weight=1.0, focal_weight=1.0,
                          label_smoothing=0.0)
    loss = jax.block_until_ready(loss)
    ref = _focal_bce_loss_ref(logits, targets,
                              alpha=0.25, gamma=2.0,
                              bce_weight=1.0, focal_weight=1.0,
                              label_smoothing=0.0)
    # slightly looser rtol because the kernel uses the EUP's approx reciprocal
    assert jnp.allclose(loss, ref, rtol=2e-3, atol=1e-5), (loss, ref)

    # Exercise the multi-chunk / partition-padding / tail-mask / label-smoothing
    # path at a still-small size (block_rows=8 -> 3 chunks -> 2 partitions).
    B2, C2 = 20, 256
    logits2 = jax.random.normal(k3, (B2, C2), dtype=jnp.float32) * 2.0
    targets2 = jax.random.bernoulli(k4, p=0.1, shape=(B2, C2)).astype(jnp.float32)
    loss2 = focal_bce_loss(logits2, targets2,
                           alpha=0.25, gamma=2.0,
                           bce_weight=0.5, focal_weight=2.0,
                           label_smoothing=0.1, block_rows=8)
    loss2 = jax.block_until_ready(loss2)
    ref2 = _focal_bce_loss_ref(logits2, targets2,
                               alpha=0.25, gamma=2.0,
                               bce_weight=0.5, focal_weight=2.0,
                               label_smoothing=0.1)
    assert jnp.allclose(loss2, ref2, rtol=2e-3, atol=1e-5), (loss2, ref2)

    # TODO(synk): reduction='none'/'sum' and the optional per-class BCE `weight`
    # tensor are not implemented; only the default 'mean' path is covered.
    print("KERNEL_OK")
</pallas_src>

<mosaic_0001>
module attributes {stable_mosaic.version = 11 : i64} {
  func.func @_focal_bce_kernel(%arg0: i32, %arg1: i32, %arg2: memref<8x256xf32, #tpu.memory_space<vmem>>, %arg3: memref<8x256xf32, #tpu.memory_space<vmem>>, %arg4: memref<1x1xf32, #tpu.memory_space<vmem>>, %arg5: memref<8x256xf32, #tpu.memory_space<vmem>>) attributes {dimension_semantics = [#tpu.dimension_semantics<parallel>, #tpu.dimension_semantics<arbitrary>], iteration_bounds = array<i64: 1, 1>, scalar_prefetch = 0 : i64, scratch_operands = 1 : i64, tpu.core_type = #tpu.core_type<tc>, window_params = [{transform_indices = @transform_0, window_bounds = array<i64: 8, 256>}, {transform_indices = @transform_1, window_bounds = array<i64: 8, 256>}, {transform_indices = @transform_2, window_bounds = array<i64: 1, 1>}]} {
    %c0_i32 = arith.constant 0 : i32
    %0 = arith.cmpi eq, %arg1, %c0_i32 : i32
    %1 = arith.extui %0 : i1 to i32
    %c0_i32_0 = arith.constant 0 : i32
    %2 = arith.cmpi ne, %1, %c0_i32_0 : i32
    scf.if %2 {
      %cst_22 = arith.constant 0.000000e+00 : f32
      %53 = vector.broadcast %cst_22 : f32 to vector<8x256xf32>
      %c0_23 = arith.constant 0 : index
      %c0_24 = arith.constant 0 : index
      %54 = vector.load %arg5[%c0_23, %c0_24] : memref<8x256xf32, #tpu.memory_space<vmem>>, vector<8x256xf32>
      tpu.vector_store %arg5[%c0_23, %c0_24], %53 {strides = array<i32>} : memref<8x256xf32, #tpu.memory_space<vmem>>, vector<8x256xf32>,
    } else {
    }
    %c0 = arith.constant 0 : index
    %c0_1 = arith.constant 0 : index
    %3 = vector.load %arg2[%c0, %c0_1] : memref<8x256xf32, #tpu.memory_space<vmem>>, vector<8x256xf32>
    %c0_2 = arith.constant 0 : index
    %c0_3 = arith.constant 0 : index
    %4 = vector.load %arg3[%c0_2, %c0_3] : memref<8x256xf32, #tpu.memory_space<vmem>>, vector<8x256xf32>
    %5 = math.absf %3 : vector<8x256xf32>
    %cst = arith.constant 0.000000e+00 : f32
    %6 = vector.broadcast %cst : f32 to vector<8x256xf32>
    %7 = arith.subf %6, %5 : vector<8x256xf32>
    %8 = math.exp %7 : vector<8x256xf32>
    %cst_4 = arith.constant 0.000000e+00 : f32
    %9 = vector.broadcast %cst_4 : f32 to vector<8x256xf32>
    %10 = arith.maximumf %3, %9 : vector<8x256xf32>
    %11 = arith.mulf %3, %4 : vector<8x256xf32>
    %12 = arith.subf %10, %11 : vector<8x256xf32>
    %13 = math.log1p %8 : vector<8x256xf32>
    %14 = arith.addf %12, %13 : vector<8x256xf32>
    %cst_5 = arith.constant 1.000000e+00 : f32
    %15 = vector.broadcast %cst_5 : f32 to vector<8x256xf32>
    %16 = arith.addf %15, %8 : vector<8x256xf32>
    %17 = tpu.reciprocal %16 {approx = true} : vector<8x256xf32> -> vector<8x256xf32>
    %cst_6 = arith.constant 0.000000e+00 : f32
    %18 = vector.broadcast %cst_6 : f32 to vector<8x256xf32>
    %19 = arith.cmpf oge, %3, %18 : vector<8x256xf32>
    %cst_7 = arith.constant 1.000000e+00 : f32
    %20 = vector.broadcast %cst_7 : f32 to vector<8x256xf32>
    %21 = arith.select %19, %20, %8 : vector<8x256xi1>, vector<8x256xf32>
    %22 = arith.mulf %21, %17 : vector<8x256xf32>
    %23 = arith.mulf %22, %4 : vector<8x256xf32>
    %cst_8 = arith.constant 1.000000e+00 : f32
    %24 = vector.broadcast %cst_8 : f32 to vector<8x256xf32>
    %25 = arith.subf %24, %22 : vector<8x256xf32>
    %cst_9 = arith.constant 1.000000e+00 : f32
    %26 = vector.broadcast %cst_9 : f32 to vector<8x256xf32>
    %27 = arith.subf %26, %4 : vector<8x256xf32>
    %28 = arith.mulf %25, %27 : vector<8x256xf32>
    %29 = arith.addf %23, %28 : vector<8x256xf32>
    %cst_10 = arith.constant 1.000000e+00 : f32
    %30 = vector.broadcast %cst_10 : f32 to vector<8x256xf32>
    %31 = arith.subf %30, %29 : vector<8x256xf32>
    %32 = arith.mulf %31, %31 : vector<8x256xf32>
    %33 = arith.mulf %14, %32 : vector<8x256xf32>
    %cst_11 = arith.constant 2.500000e-01 : f32
    %34 = vector.broadcast %cst_11 : f32 to vector<8x256xf32>
    %35 = arith.mulf %34, %4 : vector<8x256xf32>
    %cst_12 = arith.constant 1.000000e+00 : f32
    %36 = vector.broadcast %cst_12 : f32 to vector<8x256xf32>
    %37 = arith.subf %36, %4 : vector<8x256xf32>
    %cst_13 = arith.constant 7.500000e-01 : f32
    %38 = vector.broadcast %cst_13 : f32 to vector<8x256xf32>
    %39 = arith.mulf %38, %37 : vector<8x256xf32>
    %40 = arith.addf %35, %39 : vector<8x256xf32>
    %41 = arith.mulf %40, %33 : vector<8x256xf32>
    %cst_14 = arith.constant 1.000000e+00 : f32
    %42 = vector.broadcast %cst_14 : f32 to vector<8x256xf32>
    %43 = arith.mulf %42, %14 : vector<8x256xf32>
    %cst_15 = arith.constant 1.000000e+00 : f32
    %44 = vector.broadcast %cst_15 : f32 to vector<8x256xf32>
    %45 = arith.mulf %44, %41 : vector<8x256xf32>
    %46 = arith.addf %43, %45 : vector<8x256xf32>
    %c0_16 = arith.constant 0 : index
    %c0_17 = arith.constant 0 : index
    %47 = vector.load %arg5[%c0_16, %c0_17] : memref<8x256xf32, #tpu.memory_space<vmem>>, vector<8x256xf32>
    %48 = arith.addf %47, %46 : vector<8x256xf32>
    %c0_18 = arith.constant 0 : index
    %c0_19 = arith.constant 0 : index
    %49 = vector.load %arg5[%c0_18, %c0_19] : memref<8x256xf32, #tpu.memory_space<vmem>>, vector<8x256xf32>
    tpu.vector_store %arg5[%c0_18, %c0_19], %48 {strides = array<i32>} : memref<8x256xf32, #tpu.memory_space<vmem>>, vector<8x256xf32>,
    %c0_i32_20 = arith.constant 0 : i32
    %50 = arith.cmpi eq, %arg1, %c0_i32_20 : i32
    %51 = arith.extui %50 : i1 to i32
    %c0_i32_21 = arith.constant 0 : i32
    %52 = arith.cmpi ne, %51, %c0_i32_21 : i32
    scf.if %52 {
      %c0_22 = arith.constant 0 : index
      %c0_23 = arith.constant 0 : index
      %53 = vector.load %arg5[%c0_22, %c0_23] : memref<8x256xf32, #tpu.memory_space<vmem>>, vector<8x256xf32>
      %cst_24 = arith.constant dense<0.000000e+00> : vector<8xf32>
      %54 = vector.multi_reduction <add>, %53, %cst_24 [1] : vector<8x256xf32> to vector<8xf32>
      %55 = vector.shape_cast %54 : vector<8xf32> to vector<8x1xf32>
      %cst_25 = arith.constant dense<0.000000e+00> : vector<1xf32>
      %56 = vector.multi_reduction <add>, %55, %cst_25 [0] : vector<8x1xf32> to vector<1xf32>
      %57 = vector.shape_cast %56 : vector<1xf32> to vector<1x1xf32>
      %cst_26 = arith.constant 4.8828125E-4 : f32
      %58 = vector.broadcast %cst_26 : f32 to vector<1x1xf32>
      %59 = arith.mulf %57, %58 : vector<1x1xf32>
      %c0_27 = arith.constant 0 : index
      %c0_28 = arith.constant 0 : index
      %60 = vector.load %arg4[%c0_27, %c0_28] : memref<1x1xf32, #tpu.memory_space<vmem>>, vector<1x1xf32>
      tpu.vector_store %arg4[%c0_27, %c0_28], %59 {strides = array<i32>} : memref<1x1xf32, #tpu.memory_space<vmem>>, vector<1x1xf32>,
    } else {
    }
    return
  }
  func.func @transform_0(%arg0: i32, %arg1: i32) -> (i32, i32) {
    %c1_i32 = arith.constant 1 : i32
    %0 = arith.muli %arg0, %c1_i32 : i32
    %1 = arith.addi %0, %arg1 : i32
    %c0_i32 = arith.constant 0 : i32
    %c0_i32_0 = arith.constant 0 : i32
    return %1, %c0_i32 : i32, i32
  }
  func.func @transform_1(%arg0: i32, %arg1: i32) -> (i32, i32) {
    %c1_i32 = arith.constant 1 : i32
    %0 = arith.muli %arg0, %c1_i32 : i32
    %1 = arith.addi %0, %arg1 : i32
    %c0_i32 = arith.constant 0 : i32
    %c0_i32_0 = arith.constant 0 : i32
    return %1, %c0_i32 : i32, i32
  }
  func.func @transform_2(%arg0: i32, %arg1: i32) -> (i32, i32) {
    %c0_i32 = arith.constant 0 : i32
    %c0_i32_0 = arith.constant 0 : i32
    return %arg0, %c0_i32 : i32, i32
  }
}

</mosaic_0001>

<bundles_post_ra>
// kernel: tpu_custom_call.1
= control target key start
LH: loop header
LB: loop body
LE: loop exit
PB: predicated region body
PF: predicated region fallthrough
CT: control target
= control target key end

     0   :  { %7 = vsyncpa [#allocation4], 0  ;;  %s303_s0 = inlined_call_operand.hbm [shape: f32[8,256], index: 0, kind: input, shape index: {}]   ;;  %s304_s1 = inlined_call_operand.hbm [shape: f32[8,256], index: 1, kind: input, shape index: {}]   ;;  %s305_s2 = inlined_call_operand.hbm [shape: f32[1,1], index: 2, kind: output, shape index: {}]  }
   0x1   :  { %8 = vsyncpa [#allocation7], 0 }
   0x2   :  { %9 = vsyncpa [#allocation5], 0  ;;  %s19_s11 = sshll.u32 %s303_s0, 4  ;;  %s264_s12 = smov [#allocation3]   ;;  %s20_s11 = int_to_ptr.hbm [resolvable:$true] %s19_s11 }
   0x3   :  { %s21_s13 = sshll.u32 %s264_s12, 4  ;;  %s34_s16 = sshll.u32 %s304_s1, 4  ;;  %s22_s13 = int_to_ptr.vmem [resolvable:$true] %s21_s13  ;;  %s35_s16 = int_to_ptr.hbm [resolvable:$true] %s34_s16 }
   0x4   :  { %24 = dma.hbm_to_vmem [thread:$0]  %s20_s11, 256, %s22_s13, [#allocation4]  }
   0x5   :  { %s265_s17 = smov [#allocation6]  }
   0x6   :  { %s36_s18 = sshll.u32 %s265_s17, 4  ;;  %s37_s18 = int_to_ptr.vmem [resolvable:$true] %s36_s18 }
   0x7   :  { %39 = dma.hbm_to_vmem [thread:$0]  %s35_s16, 256, %s37_s18, [#allocation7]  }
   0x8   :  { %258 = dma.done.wait [#allocation4], 256  }
   0x9   :  { %259 = vsyncadd [#allocation4], 4294967040 }
   0xa   :  { %260 = dma.done.wait [#allocation7], 256  }
   0xb   :  { %261 = vsyncadd [#allocation7], 4294967040  ;;  %v56_v0 = vld [vmem:[#allocation3] sm:$0xff]  ;;  %v57_v1 = vld [vmem:[#allocation3 + $0x8] sm:$0xff]  ;;  %s266_s0 = smov [#allocation8]   ;;  %s160_s21 = sshll.u32 %s305_s2, 4  ;;  %s161_s21 = int_to_ptr.hbm [resolvable:$true] %s160_s21 }
   0xc   :  { %v60_v2 = vand.u32 2147483647, %v56_v0  ;;  %v61_v3 = vand.u32 2147483647, %v57_v1  ;;  %vm98_vm0 = vcmp.ge.f32.partialorder %v56_v0, 0.0  ;;  %vm99_vm1 = vcmp.ge.f32.partialorder %v57_v1, 0.0 }
   0xd   :  { %v58_v15 = vld [vmem:[#allocation6] sm:$0xff]  ;;  %v59_v16 = vld [vmem:[#allocation6 + $0x8] sm:$0xff]  ;;  %v68_v24 = vmax.f32 %v56_v0, 0.0  ;;  %v69_v25 = vmax.f32 %v57_v1, 0.0  ;;  %s158_s1 = sshll.u32 %s266_s0, 4  ;;  %vm151_vm4 = vcmask 0   ;;  %s159_s1 = int_to_ptr.vmem [resolvable:$true] %s158_s1 }
   0xe   :  { %v62_v4 = vsub.f32 0.0, %v60_v2  ;;  %v63_v5 = vsub.f32 0.0, %v61_v3  ;;  %v70_v26 = vmul.f32 %v58_v15, %v56_v0  ;;  %v71_v29 = vmul.f32 %v59_v16, %v57_v1 }
   0xf   :  { %v108_v31 = vsub.f32 1.0, %v58_v15  ;;  %v109_v32 = vsub.f32 1.0, %v59_v16  ;;  %v120_v51 = vmul.f32 0.25, %v58_v15  ;;  %v121_v54 = vmul.f32 0.25, %v59_v16 }
  0x10   :  { %v64_v6 = vmul.f32 1.442695, %v62_v4  ;;  %v66_v7 = vmul.f32 1.442695, %v63_v5  ;;  %v72_v44 = vsub.f32 %v68_v24, %v70_v26  ;;  %v73_v46 = vsub.f32 %v69_v25, %v71_v29 }
  0x11   :  { %v122_v52 = vmul.f32 0.75, %v108_v31  ;;  %v123_v55 = vmul.f32 0.75, %v109_v32 }
  0x12   :  { %174 = vpow2.f32 %v64_v6 }
  0x13   :  { %176 = vpow2.f32 %v66_v7  ;;  %v124_v61 = vadd.f32 %v122_v52, %v120_v51  ;;  %v125_v63 = vadd.f32 %v123_v55, %v121_v54 }
  0x18   :  { %v175_v8 = vpop.eup %174 }
  0x19   :  { %v177_v9 = vpop.eup %176  ;;  %v74_v10 = vadd.f32 1.0, %v175_v8  ;;  %v77_v12 = vmul.f32 -0.5, %v175_v8  ;;  %v80_v18 = vand.u32 2147483647, %v175_v8  ;;  %v100_v19 = vsel %vm98_vm0, 1.0, %v175_v8 }
  0x1a   :  { %v83_v11 = vadd.f32 1.0, %v177_v9  ;;  %v86_v13 = vmul.f32 -0.5, %v177_v9  ;;  %v101_v22 = vsel %vm99_vm1, 1.0, %v177_v9  ;;  %v89_v27 = vand.u32 2147483647, %v177_v9 }
  0x1b   :  { %178 = vlog2.f32 %v74_v10  ;;  %v78_v17 = vadd.f32 1.0, %v77_v12  ;;  %vm288_vm2 = vcmp.lt.f32.partialorder %v80_v18, 0.0004427343 }
  0x1c   :  { %180 = vlog2.f32 %v83_v11  ;;  %v87_v21 = vadd.f32 1.0, %v86_v13  ;;  %vm292_vm3 = vcmp.lt.f32.partialorder %v89_v27, 0.0004427343 }
  0x1d   :  { %182 = vrcp.f32 %v74_v10  ;;  %v79_v34 = vmul.f32 %v175_v8, %v78_v17 }
  0x1e   :  { %184 = vrcp.f32 %v83_v11  ;;  %v88_v38 = vmul.f32 %v177_v9, %v87_v21 }
  0x21   :  { %v179_v14 = vpop.eup %178 }
  0x22   :  { %v181_v20 = vpop.eup %180  ;;  %v76_v33 = vmul.f32 0.6931472, %v179_v14 }
  0x23   :  { %v183_v23 = vpop.eup %182  ;;  %v85_v37 = vmul.f32 0.6931472, %v181_v20 }
  0x24   :  { %v185_v28 = vpop.eup %184  ;;  %v102_v30 = vmul.f32 %v183_v23, %v100_v19  ;;  %v82_v47 = vsel %vm288_vm2, %v79_v34, %v76_v33 }
  0x25   :  { %v103_v36 = vmul.f32 %v185_v28, %v101_v22  ;;  %v91_v49 = vsel %vm292_vm3, %v88_v38, %v85_v37  ;;  %v92_v56 = vadd.f32 %v82_v47, %v72_v44 }
  0x26   :  { %v104_v39 = vmul.f32 %v102_v30, %v58_v15  ;;  %v106_v40 = vsub.f32 1.0, %v102_v30  ;;  %v93_v58 = vadd.f32 %v91_v49, %v73_v46 }
  0x27   :  { %v105_v42 = vmul.f32 %v103_v36, %v59_v16  ;;  %v107_v43 = vsub.f32 1.0, %v103_v36 }
  0x28   :  { %v110_v45 = vmul.f32 %v108_v31, %v106_v40 }
  0x29   :  { %v111_v48 = vmul.f32 %v109_v32, %v107_v43 }
  0x2a   :  { %v112_v50 = vadd.f32 %v110_v45, %v104_v39 }
  0x2b   :  { %v113_v53 = vadd.f32 %v111_v48, %v105_v42 }
  0x2c   :  { %v114_v57 = vsub.f32 1.0, %v112_v50 }
  0x2d   :  { %v115_v59 = vsub.f32 1.0, %v113_v53 }
  0x2e   :  { %v116_v60 = vmul.f32 %v114_v57, %v114_v57 }
  0x2f   :  { %v117_v62 = vmul.f32 %v115_v59, %v115_v59 }
  0x30   :  { %v118_v0 = vmul.f32 %v116_v60, %v92_v56 }
  0x31   :  { %v119_v1 = vmul.f32 %v117_v62, %v93_v58 }
  0x32   :  { %v126_v2 = vmul.f32 %v124_v61, %v118_v0 }
  0x33   :  { %v127_v3 = vmul.f32 %v125_v63, %v119_v1 }
  0x34   :  { %v128_v4 = vadd.f32 %v126_v2, %v92_v56 }
  0x35   :  { %v129_v5 = vadd.f32 %v127_v3, %v93_v58 }
  0x37   :  { %v141_v6 = vadd.f32 %v129_v5, %v128_v4 }
  0x39   :  { %142 = vadd.xlane.f32.xlu0 %v141_v6 }
  0xac   :  { %v143_v7 = vpop.xlane.xlu0 %142 }
  0xad   :  { %v144_v8 = vrot.slane %v143_v7, 4 }
  0xaf   :  { %v145_v9 = vadd.f32 %v144_v8, %v143_v7 }
  0xb1   :  { %v146_v10 = vrot.slane %v145_v9, 2 }
  0xb3   :  { %v147_v11 = vadd.f32 %v146_v10, %v145_v9 }
  0xb5   :  { %v148_v12 = vrot.slane %v147_v11, 1 }
  0xb7   :  { %v149_v13 = vadd.f32 %v148_v12, %v147_v11 }
  0xb9   :  { %v150_v14 = vmul.f32 0.00048828125, %v149_v13 }
  0xbb   :  { %152 = vst.msk [vmem:[#allocation8] sm:$0x1] %vm151_vm4, %v150_v14 }
  0xbc   :  { %163 = dma.vmem_to_hbm [thread:$0]  %s159_s1, 16, %s161_s21, [#allocation5]  }
  0xbd   :  { %262 = dma.done.wait [#allocation5], 16  }
  0xbe   :  { %263 = vsyncadd [#allocation5], 4294967280 }
  0xbf   :  { %168 = vsyncpa [#allocation4], 1 }
  0xc0   :  { %169 = vsyncpa [#allocation7], 1 }
  0xc1   :  { %170 = vsyncpa [#allocation5], 1 }

</bundles_post_ra>
